<compile_context>
chip_gen: v7x
topology: tpu7x:2x2x1
jax: 0.10.0
libtpu: 0.0.40
codegen_flags: <defaults>
</compile_context>

<pallas_src>
import jax
import jax.numpy as jnp
from jax import lax
from jax.experimental import pallas as pl
from jax.experimental.pallas import tpu as pltpu

EMB_DIM = 32
NUM_HEADS = 4
HEAD_DIM = EMB_DIM // NUM_HEADS
SEQ_LEN = 4            # fc input dim is EMB_DIM * 4 + 6  => sequence length must be 4
SYN_DIM = 6
HIDDEN = 64
NUM_CLASSES = 2
E4 = EMB_DIM * SEQ_LEN           # 128 = flattened attention width
GATHER_W = E4 * (1 + 2 * SEQ_LEN)  # 1152 = q_cat + 4 k_tiles + 4 v_tiles
MAX_BATCH_TILE = 1024            # rows per grid step (multiple of 8)


def _round_up(x, m):
    return (x + m - 1) // m * m


def draw_kernel(ids_ref, syn_ref, wg_ref, bg_ref, wsc_ref, wexp_ref,
                w1a_ref, w1b_ref, b1_ref, w2_ref, b2_ref, out_ref):
    # ids_ref  : (TB, 4)        int32 deck ids
    # syn_ref  : (TB, 6)        f32
    # wg_ref   : (4*D, 1152)    f32 fused gather/QKV/layout weight
    # bg_ref   : (1, 1152)      f32 matching bias
    # wsc_ref  : (128, 16)      f32 kron(I4, head_sum * 1/sqrt(hd))
    # wexp_ref : (16, 128)      f32 kron(I4, head_expand)
    # w1a_ref  : (128, 64)      f32 blockdiag(Wo.T) @ W1[:, :128].T (out-proj folded)
    # w1b_ref  : (6, 64)        f32 W1[:, 128:].T
    # b1_ref   : (1, 64)        f32 b1 + tile(bo) @ W1[:, :128].T
    # w2_ref   : (64, 2)   b2_ref: (1, 2)
    TB = ids_ref.shape[0]
    KD = wg_ref.shape[0]                      # SEQ_LEN * num_decks
    D = KD // SEQ_LEN

    ids = ids_ref[...]

    # Joint one-hot over (position, deck id): column p*D + d is 1 iff ids[b,p]==d.
    col = lax.broadcasted_iota(jnp.int32, (TB, KD), 1)
    onehot = jnp.zeros((TB, KD), jnp.float32)
    for p in range(SEQ_LEN):
        onehot = onehot + jnp.where(col == ids[:, p:p + 1] + p * D, 1.0, 0.0)

    # Fused gather + QKV projection; output already laid out as
    #   [ q_cat (128) | k_tile_0..3 (4x128) | v_tile_0..3 (4x128) ]
    gathered = (jnp.dot(onehot, wg_ref[...], preferred_element_type=jnp.float32)
                + bg_ref[...])                                        # (TB, 1152)
    q_cat = gathered[:, 0:E4]                                         # (TB, 128)

    wsc = wsc_ref[...]                                                # (128, 16)
    wexp = wexp_ref[...]                                              # (16, 128)

    # Scores of every (query i, head h) against key j: s_j[:, i*4 + h]
    s = []
    for j in range(SEQ_LEN):
        k_tile = gathered[:, E4 * (1 + j):E4 * (2 + j)]               # (TB, 128)
        s.append(jnp.dot(q_cat * k_tile, wsc,
                         preferred_element_type=jnp.float32))         # (TB, 16)

    # Numerically-stable softmax over keys j — purely elementwise across the
    # four (TB,16) score arrays (no lane reductions / shuffles needed).
    m = s[0]
    for sj in s[1:]:
        m = jnp.maximum(m, sj)
    e = [jnp.exp(sj - m) for sj in s]
    denom = e[0]
    for ej in e[1:]:
        denom = denom + ej
    inv = pl.reciprocal(denom, approx=True)                           # (TB, 16)

    # Context accumulation, directly in the flattened layout [i*32 + e].
    ctx = None
    for j in range(SEQ_LEN):
        pb = jnp.dot(e[j] * inv, wexp,
                     preferred_element_type=jnp.float32)              # (TB, 128)
        v_tile = gathered[:, E4 * (1 + SEQ_LEN + j):E4 * (2 + SEQ_LEN + j)]
        term = pb * v_tile
        ctx = term if ctx is None else ctx + term                     # (TB, 128)

    # fc head (attention out-proj already folded into w1a / b1).
    h1 = (jnp.dot(ctx, w1a_ref[...], preferred_element_type=jnp.float32)
          + jnp.dot(syn_ref[...], w1b_ref[...], preferred_element_type=jnp.float32)
          + b1_ref[...])
    h1 = jnp.maximum(h1, 0.0)
    out_ref[...] = (jnp.dot(h1, w2_ref[...], preferred_element_type=jnp.float32)
                    + b2_ref[...])


def init_params(key, num_decks):
    ks = jax.random.split(key, 8)
    p = {}
    p['emb_table'] = jax.random.normal(ks[0], (num_decks, EMB_DIM), jnp.float32)
    s = 1.0 / jnp.sqrt(jnp.float32(EMB_DIM))
    in_proj_w = jax.random.normal(ks[1], (3 * EMB_DIM, EMB_DIM), jnp.float32) * s
    in_proj_b = jax.random.normal(ks[2], (3 * EMB_DIM,), jnp.float32) * 0.02
    p['wq'], p['wk'], p['wv'] = (in_proj_w[:EMB_DIM],
                                 in_proj_w[EMB_DIM:2 * EMB_DIM],
                                 in_proj_w[2 * EMB_DIM:])
    p['bq'], p['bk'], p['bv'] = (in_proj_b[:EMB_DIM],
                                 in_proj_b[EMB_DIM:2 * EMB_DIM],
                                 in_proj_b[2 * EMB_DIM:])
    p['wo'] = jax.random.normal(ks[3], (EMB_DIM, EMB_DIM), jnp.float32) * s
    p['bo'] = jax.random.normal(ks[4], (EMB_DIM,), jnp.float32) * 0.02
    fc_in = EMB_DIM * SEQ_LEN + SYN_DIM                       # 134
    p['w1'] = jax.random.normal(ks[5], (HIDDEN, fc_in), jnp.float32) * (1.0 / jnp.sqrt(jnp.float32(fc_in)))
    p['b1'] = jax.random.normal(ks[6], (HIDDEN,), jnp.float32) * 0.02
    p['w2'] = jax.random.normal(ks[7], (NUM_CLASSES, HIDDEN), jnp.float32) * (1.0 / jnp.sqrt(jnp.float32(HIDDEN)))
    p['b2'] = jnp.zeros((NUM_CLASSES,), jnp.float32)
    return p


def draw_model_forward(params, deck_batch, synergy_batch):
    B = deck_batch.shape[0]
    num_decks = params['emb_table'].shape[0]

    # Batch tile: multiple of 8 sublanes, capped so intermediates (biggest is
    # the (TB, 1152) gather slab ~4.6 MiB at TB=1024) stay well inside VMEM.
    TB = min(MAX_BATCH_TILE, _round_up(B, 8))
    B_pad = _round_up(B, TB)
    if B_pad != B:
        deck_batch = jnp.pad(deck_batch, ((0, B_pad - B), (0, 0)))
        synergy_batch = jnp.pad(synergy_batch, ((0, B_pad - B), (0, 0)))
    deck_batch = deck_batch.astype(jnp.int32)
    synergy_batch = synergy_batch.astype(jnp.float32)
    grid = (B_pad // TB,)

    # ---- host-side (trace-time) weight prep --------------------------------
    table = params['emb_table'].astype(jnp.float32)
    eye4 = jnp.eye(SEQ_LEN, dtype=jnp.float32)

    # Fold the embedding table into the Q/K/V projections and build the fused
    # gather weight whose output is already in the lane layout the kernel wants.
    table_q = table @ params['wq'].T                                   # (D, 32)
    table_k = table @ params['wk'].T
    table_v = table @ params['wv'].T
    w_gather = jnp.concatenate([
        jnp.kron(eye4, table_q),                                       # -> q_cat
        jnp.kron(eye4, jnp.tile(table_k, (1, SEQ_LEN))),               # -> k tiles
        jnp.kron(eye4, jnp.tile(table_v, (1, SEQ_LEN))),               # -> v tiles
    ], axis=1)                                                         # (4D, 1152)
    b_gather = jnp.concatenate([
        jnp.tile(params['bq'], SEQ_LEN),
        jnp.tile(params['bk'], SEQ_LEN * SEQ_LEN),
        jnp.tile(params['bv'], SEQ_LEN * SEQ_LEN),
    ]).reshape(1, GATHER_W)

    head_of_lane = jnp.arange(EMB_DIM) // HEAD_DIM
    hmat = (head_of_lane[:, None] == jnp.arange(NUM_HEADS)[None, :]
            ).astype(jnp.float32)                                      # (32, 4)
    scale = 1.0 / jnp.sqrt(jnp.float32(HEAD_DIM))
    w_score = jnp.kron(eye4, hmat * scale)                             # (128, 16)
    w_expand = jnp.kron(eye4, hmat.T)                                  # (16, 128)

    # Fold the (linear) attention output projection into fc1's attention block.
    w1 = params['w1']                                                  # (64, 134)
    w1a_t = w1[:, :E4].T                                               # (128, 64)
    wo_bd = jnp.kron(eye4, params['wo'].T)                             # (128, 128)
    w1a_eff = wo_bd @ w1a_t                                            # (128, 64)
    bo_tile = jnp.tile(params['bo'], SEQ_LEN).reshape(1, E4)
    b1_eff = params['b1'].reshape(1, HIDDEN) + bo_tile @ w1a_t         # (1, 64)
    w1b_t = w1[:, E4:].T                                               # (6, 64)
    w2_t = params['w2'].T                                              # (64, 2)
    b2 = params['b2'].reshape(1, NUM_CLASSES)

    def rep_spec(arr):
        # Weight blocks: full array, constant block index (stays resident).
        return pl.BlockSpec(arr.shape, lambda b: (0, 0))

    in_specs = [
        pl.BlockSpec((TB, SEQ_LEN), lambda b: (b, 0)),       # deck ids
        pl.BlockSpec((TB, SYN_DIM), lambda b: (b, 0)),       # synergy
        rep_spec(w_gather), rep_spec(b_gather),
        rep_spec(w_score), rep_spec(w_expand),
        rep_spec(w1a_eff), rep_spec(w1b_t), rep_spec(b1_eff),
        rep_spec(w2_t), rep_spec(b2),
    ]
    out_specs = pl.BlockSpec((TB, NUM_CLASSES), lambda b: (b, 0))

    flops_per_row = 2 * (
        SEQ_LEN * num_decks * GATHER_W                      # fused gather/QKV/layout
        + 2 * SEQ_LEN * E4 * (SEQ_LEN * NUM_HEADS)          # scores + prob expand
        + 2 * SEQ_LEN * E4                                  # context mult/add
        + E4 * HIDDEN + SYN_DIM * HIDDEN + HIDDEN * NUM_CLASSES)
    weight_bytes = 4 * (SEQ_LEN * num_decks * GATHER_W + GATHER_W
                        + 2 * E4 * SEQ_LEN * NUM_HEADS
                        + E4 * HIDDEN + SYN_DIM * HIDDEN + HIDDEN
                        + HIDDEN * NUM_CLASSES + NUM_CLASSES)
    cost = pl.CostEstimate(
        flops=int(B_pad) * int(flops_per_row),
        transcendentals=int(B_pad) * SEQ_LEN * SEQ_LEN * NUM_HEADS,
        bytes_accessed=int(B_pad) * 4 * (SEQ_LEN + SYN_DIM + NUM_CLASSES) + weight_bytes,
    )

    out_padded = pl.pallas_call(
        draw_kernel,
        out_shape=jax.ShapeDtypeStruct((B_pad, NUM_CLASSES), jnp.float32),
        grid=grid,
        in_specs=in_specs,
        out_specs=out_specs,
        compiler_params=pltpu.CompilerParams(
            dimension_semantics=("parallel",),
            vmem_limit_bytes=32 * 1024 * 1024,
        ),
        cost_estimate=cost,
    )(deck_batch, synergy_batch, w_gather, b_gather, w_score, w_expand,
      w1a_eff, w1b_t, b1_eff, w2_t, b2)
    return out_padded[:B]


def draw_model_reference(params, deck_batch, synergy_batch):
    # Pure-JAX reference mirroring torch semantics (eval mode).
    emb = params['emb_table'][deck_batch].astype(jnp.float32)
    q = emb @ params['wq'].T + params['bq']
    k = emb @ params['wk'].T + params['bk']
    v = emb @ params['wv'].T + params['bv']
    B, S, E = emb.shape

    def split(x):
        return x.reshape(B, S, NUM_HEADS, HEAD_DIM).transpose(0, 2, 1, 3)

    qh, kh, vh = split(q), split(k), split(v)
    scores = jnp.einsum('bhqd,bhkd->bhqk', qh, kh) / jnp.sqrt(jnp.float32(HEAD_DIM))
    probs = jax.nn.softmax(scores, axis=-1)
    attn = jnp.einsum('bhqk,bhkd->bhqd', probs, vh).transpose(0, 2, 1, 3).reshape(B, S, E)
    attn = attn @ params['wo'].T + params['bo']
    x = jnp.concatenate([attn.reshape(B, -1), synergy_batch.astype(jnp.float32)], axis=1)
    h1 = jnp.maximum(x @ params['w1'].T + params['b1'], 0.0)
    return h1 @ params['w2'].T + params['b2']


if __name__ == "__main__":
    key = jax.random.PRNGKey(0)
    k_param, k_deck, k_syn, k_deck2, k_syn2 = jax.random.split(key, 5)

    num_decks = 10
    params = init_params(k_param, num_decks)

    # Small test (spec-consistent shapes).
    batch = 2
    deck_batch = jax.random.randint(k_deck, (batch, SEQ_LEN), 0, num_decks, dtype=jnp.int32)
    synergy_batch = jax.random.normal(k_syn, (batch, SYN_DIM), jnp.float32)
    out = jax.block_until_ready(draw_model_forward(params, deck_batch, synergy_batch))
    ref = draw_model_reference(params, deck_batch, synergy_batch)
    assert out.shape == (batch, NUM_CLASSES)
    assert jnp.allclose(out, ref, rtol=1e-2, atol=1e-2), (out, ref)

    # Larger test exercising the batch grid + padding path (multiple tiles).
    batch2 = 2500
    deck_batch2 = jax.random.randint(k_deck2, (batch2, SEQ_LEN), 0, num_decks, dtype=jnp.int32)
    synergy_batch2 = jax.random.normal(k_syn2, (batch2, SYN_DIM), jnp.float32)
    out2 = jax.block_until_ready(draw_model_forward(params, deck_batch2, synergy_batch2))
    ref2 = draw_model_reference(params, deck_batch2, synergy_batch2)
    assert out2.shape == (batch2, NUM_CLASSES)
    assert jnp.allclose(out2, ref2, rtol=1e-2, atol=1e-2)

    print("KERNEL_OK")
</pallas_src>

<mosaic_0001>
module attributes {stable_mosaic.version = 11 : i64} {
  func.func @draw_kernel(%arg0: i32, %arg1: memref<8x4xi32, #tpu.memory_space<vmem>>, %arg2: memref<8x6xf32, #tpu.memory_space<vmem>>, %arg3: memref<40x1152xf32, #tpu.memory_space<vmem>>, %arg4: memref<1x1152xf32, #tpu.memory_space<vmem>>, %arg5: memref<128x16xf32, #tpu.memory_space<vmem>>, %arg6: memref<16x128xf32, #tpu.memory_space<vmem>>, %arg7: memref<128x64xf32, #tpu.memory_space<vmem>>, %arg8: memref<6x64xf32, #tpu.memory_space<vmem>>, %arg9: memref<1x64xf32, #tpu.memory_space<vmem>>, %arg10: memref<64x2xf32, #tpu.memory_space<vmem>>, %arg11: memref<1x2xf32, #tpu.memory_space<vmem>>, %arg12: memref<8x2xf32, #tpu.memory_space<vmem>>) attributes {dimension_semantics = [#tpu.dimension_semantics<parallel>], iteration_bounds = array<i64: 1>, scalar_prefetch = 0 : i64, scratch_operands = 0 : i64, tpu.core_type = #tpu.core_type<tc>, window_params = [{transform_indices = @transform_0, window_bounds = array<i64: 8, 4>}, {transform_indices = @transform_1, window_bounds = array<i64: 8, 6>}, {pipeline_mode = #tpu.pipeline_mode<synchronous>, transform_indices = @transform_2, window_bounds = array<i64: 40, 1152>}, {pipeline_mode = #tpu.pipeline_mode<synchronous>, transform_indices = @transform_3, window_bounds = array<i64: 1, 1152>}, {pipeline_mode = #tpu.pipeline_mode<synchronous>, transform_indices = @transform_4, window_bounds = array<i64: 128, 16>}, {pipeline_mode = #tpu.pipeline_mode<synchronous>, transform_indices = @transform_5, window_bounds = array<i64: 16, 128>}, {pipeline_mode = #tpu.pipeline_mode<synchronous>, transform_indices = @transform_6, window_bounds = array<i64: 128, 64>}, {pipeline_mode = #tpu.pipeline_mode<synchronous>, transform_indices = @transform_7, window_bounds = array<i64: 6, 64>}, {pipeline_mode = #tpu.pipeline_mode<synchronous>, transform_indices = @transform_8, window_bounds = array<i64: 1, 64>}, {pipeline_mode = #tpu.pipeline_mode<synchronous>, transform_indices = @transform_9, window_bounds = array<i64: 64, 2>}, {pipeline_mode = #tpu.pipeline_mode<synchronous>, transform_indices = @transform_10, window_bounds = array<i64: 1, 2>}, {transform_indices = @transform_11, window_bounds = array<i64: 8, 2>}]} {
    %c0 = arith.constant 0 : index
    %c0_0 = arith.constant 0 : index
    %0 = vector.load %arg1[%c0, %c0_0] : memref<8x4xi32, #tpu.memory_space<vmem>>, vector<8x4xi32>
    %1 = tpu.iota {dimensions = array<i32: 1>} : vector<8x40xi32>
    %cst = arith.constant 0.000000e+00 : f32
    %2 = vector.broadcast %cst : f32 to vector<8x40xf32>
    %3 = vector.extract_strided_slice %0 {offsets = [0, 0], sizes = [8, 1], strides = [1, 1]} : vector<8x4xi32> to vector<8x1xi32>
    %c0_i32 = arith.constant 0 : i32
    %4 = vector.broadcast %c0_i32 : i32 to vector<8x1xi32>
    %5 = arith.addi %3, %4 : vector<8x1xi32>
    %6 = vector.broadcast %5 : vector<8x1xi32> to vector<8x40xi32>
    %7 = arith.cmpi eq, %1, %6 : vector<8x40xi32>
    %cst_1 = arith.constant 1.000000e+00 : f32
    %cst_2 = arith.constant 0.000000e+00 : f32
    %8 = vector.broadcast %cst_1 : f32 to vector<8x40xf32>
    %9 = vector.broadcast %cst_2 : f32 to vector<8x40xf32>
    %10 = arith.select %7, %8, %9 : vector<8x40xi1>, vector<8x40xf32>
    %11 = arith.addf %2, %10 : vector<8x40xf32>
    %12 = vector.extract_strided_slice %0 {offsets = [0, 1], sizes = [8, 1], strides = [1, 1]} : vector<8x4xi32> to vector<8x1xi32>
    %c10_i32 = arith.constant 10 : i32
    %13 = vector.broadcast %c10_i32 : i32 to vector<8x1xi32>
    %14 = arith.addi %12, %13 : vector<8x1xi32>
    %15 = vector.broadcast %14 : vector<8x1xi32> to vector<8x40xi32>
    %16 = arith.cmpi eq, %1, %15 : vector<8x40xi32>
    %cst_3 = arith.constant 1.000000e+00 : f32
    %cst_4 = arith.constant 0.000000e+00 : f32
    %17 = vector.broadcast %cst_3 : f32 to vector<8x40xf32>
    %18 = vector.broadcast %cst_4 : f32 to vector<8x40xf32>
    %19 = arith.select %16, %17, %18 : vector<8x40xi1>, vector<8x40xf32>
    %20 = arith.addf %11, %19 : vector<8x40xf32>
    %21 = vector.extract_strided_slice %0 {offsets = [0, 2], sizes = [8, 1], strides = [1, 1]} : vector<8x4xi32> to vector<8x1xi32>
    %c20_i32 = arith.constant 20 : i32
    %22 = vector.broadcast %c20_i32 : i32 to vector<8x1xi32>
    %23 = arith.addi %21, %22 : vector<8x1xi32>
    %24 = vector.broadcast %23 : vector<8x1xi32> to vector<8x40xi32>
    %25 = arith.cmpi eq, %1, %24 : vector<8x40xi32>
    %cst_5 = arith.constant 1.000000e+00 : f32
    %cst_6 = arith.constant 0.000000e+00 : f32
    %26 = vector.broadcast %cst_5 : f32 to vector<8x40xf32>
    %27 = vector.broadcast %cst_6 : f32 to vector<8x40xf32>
    %28 = arith.select %25, %26, %27 : vector<8x40xi1>, vector<8x40xf32>
    %29 = arith.addf %20, %28 : vector<8x40xf32>
    %30 = vector.extract_strided_slice %0 {offsets = [0, 3], sizes = [8, 1], strides = [1, 1]} : vector<8x4xi32> to vector<8x1xi32>
    %c30_i32 = arith.constant 30 : i32
    %31 = vector.broadcast %c30_i32 : i32 to vector<8x1xi32>
    %32 = arith.addi %30, %31 : vector<8x1xi32>
    %33 = vector.broadcast %32 : vector<8x1xi32> to vector<8x40xi32>
    %34 = arith.cmpi eq, %1, %33 : vector<8x40xi32>
    %cst_7 = arith.constant 1.000000e+00 : f32
    %cst_8 = arith.constant 0.000000e+00 : f32
    %35 = vector.broadcast %cst_7 : f32 to vector<8x40xf32>
    %36 = vector.broadcast %cst_8 : f32 to vector<8x40xf32>
    %37 = arith.select %34, %35, %36 : vector<8x40xi1>, vector<8x40xf32>
    %38 = arith.addf %29, %37 : vector<8x40xf32>
    %c0_9 = arith.constant 0 : index
    %c0_10 = arith.constant 0 : index
    %39 = vector.load %arg3[%c0_9, %c0_10] : memref<40x1152xf32, #tpu.memory_space<vmem>>, vector<40x1152xf32>
    %cst_11 = arith.constant dense<0.000000e+00> : vector<8x1152xf32>
    %40 = tpu.matmul %38, %39, %cst_11 {dimension_numbers = #tpu.dot_dimension_numbers<[1], [0], [0], [1], [0, 0, 1, 1], [], []>} : vector<8x40xf32>, vector<40x1152xf32>, vector<8x1152xf32> -> vector<8x1152xf32>
    %c0_12 = arith.constant 0 : index
    %c0_13 = arith.constant 0 : index
    %41 = vector.load %arg4[%c0_12, %c0_13] : memref<1x1152xf32, #tpu.memory_space<vmem>>, vector<1x1152xf32>
    %42 = vector.broadcast %41 : vector<1x1152xf32> to vector<8x1152xf32>
    %43 = arith.addf %40, %42 : vector<8x1152xf32>
    %44 = vector.extract_strided_slice %43 {offsets = [0, 0], sizes = [8, 128], strides = [1, 1]} : vector<8x1152xf32> to vector<8x128xf32>
    %c0_14 = arith.constant 0 : index
    %c0_15 = arith.constant 0 : index
    %45 = vector.load %arg5[%c0_14, %c0_15] : memref<128x16xf32, #tpu.memory_space<vmem>>, vector<128x16xf32>
    %c0_16 = arith.constant 0 : index
    %c0_17 = arith.constant 0 : index
    %46 = vector.load %arg6[%c0_16, %c0_17] : memref<16x128xf32, #tpu.memory_space<vmem>>, vector<16x128xf32>
    %47 = vector.extract_strided_slice %43 {offsets = [0, 128], sizes = [8, 128], strides = [1, 1]} : vector<8x1152xf32> to vector<8x128xf32>
    %48 = arith.mulf %44, %47 : vector<8x128xf32>
    %cst_18 = arith.constant dense<0.000000e+00> : vector<8x16xf32>
    %49 = tpu.matmul %48, %45, %cst_18 {dimension_numbers = #tpu.dot_dimension_numbers<[1], [0], [0], [1], [0, 0, 1, 1], [], []>} : vector<8x128xf32>, vector<128x16xf32>, vector<8x16xf32> -> vector<8x16xf32>
    %50 = vector.extract_strided_slice %43 {offsets = [0, 256], sizes = [8, 128], strides = [1, 1]} : vector<8x1152xf32> to vector<8x128xf32>
    %51 = arith.mulf %44, %50 : vector<8x128xf32>
    %cst_19 = arith.constant dense<0.000000e+00> : vector<8x16xf32>
    %52 = tpu.matmul %51, %45, %cst_19 {dimension_numbers = #tpu.dot_dimension_numbers<[1], [0], [0], [1], [0, 0, 1, 1], [], []>} : vector<8x128xf32>, vector<128x16xf32>, vector<8x16xf32> -> vector<8x16xf32>
    %53 = vector.extract_strided_slice %43 {offsets = [0, 384], sizes = [8, 128], strides = [1, 1]} : vector<8x1152xf32> to vector<8x128xf32>
    %54 = arith.mulf %44, %53 : vector<8x128xf32>
    %cst_20 = arith.constant dense<0.000000e+00> : vector<8x16xf32>
    %55 = tpu.matmul %54, %45, %cst_20 {dimension_numbers = #tpu.dot_dimension_numbers<[1], [0], [0], [1], [0, 0, 1, 1], [], []>} : vector<8x128xf32>, vector<128x16xf32>, vector<8x16xf32> -> vector<8x16xf32>
    %56 = vector.extract_strided_slice %43 {offsets = [0, 512], sizes = [8, 128], strides = [1, 1]} : vector<8x1152xf32> to vector<8x128xf32>
    %57 = arith.mulf %44, %56 : vector<8x128xf32>
    %cst_21 = arith.constant dense<0.000000e+00> : vector<8x16xf32>
    %58 = tpu.matmul %57, %45, %cst_21 {dimension_numbers = #tpu.dot_dimension_numbers<[1], [0], [0], [1], [0, 0, 1, 1], [], []>} : vector<8x128xf32>, vector<128x16xf32>, vector<8x16xf32> -> vector<8x16xf32>
    %59 = arith.maximumf %49, %52 : vector<8x16xf32>
    %60 = arith.maximumf %59, %55 : vector<8x16xf32>
    %61 = arith.maximumf %60, %58 : vector<8x16xf32>
    %62 = arith.subf %49, %61 : vector<8x16xf32>
    %63 = math.exp %62 : vector<8x16xf32>
    %64 = arith.subf %52, %61 : vector<8x16xf32>
    %65 = math.exp %64 : vector<8x16xf32>
    %66 = arith.subf %55, %61 : vector<8x16xf32>
    %67 = math.exp %66 : vector<8x16xf32>
    %68 = arith.subf %58, %61 : vector<8x16xf32>
    %69 = math.exp %68 : vector<8x16xf32>
    %70 = arith.addf %63, %65 : vector<8x16xf32>
    %71 = arith.addf %70, %67 : vector<8x16xf32>
    %72 = arith.addf %71, %69 : vector<8x16xf32>
    %73 = tpu.reciprocal %72 {approx = true} : vector<8x16xf32> -> vector<8x16xf32>
    %74 = arith.mulf %63, %73 : vector<8x16xf32>
    %cst_22 = arith.constant dense<0.000000e+00> : vector<8x128xf32>
    %75 = tpu.matmul %74, %46, %cst_22 {dimension_numbers = #tpu.dot_dimension_numbers<[1], [0], [0], [1], [0, 0, 1, 1], [], []>} : vector<8x16xf32>, vector<16x128xf32>, vector<8x128xf32> -> vector<8x128xf32>
    %76 = vector.extract_strided_slice %43 {offsets = [0, 640], sizes = [8, 128], strides = [1, 1]} : vector<8x1152xf32> to vector<8x128xf32>
    %77 = arith.mulf %75, %76 : vector<8x128xf32>
    %78 = arith.mulf %65, %73 : vector<8x16xf32>
    %cst_23 = arith.constant dense<0.000000e+00> : vector<8x128xf32>
    %79 = tpu.matmul %78, %46, %cst_23 {dimension_numbers = #tpu.dot_dimension_numbers<[1], [0], [0], [1], [0, 0, 1, 1], [], []>} : vector<8x16xf32>, vector<16x128xf32>, vector<8x128xf32> -> vector<8x128xf32>
    %80 = vector.extract_strided_slice %43 {offsets = [0, 768], sizes = [8, 128], strides = [1, 1]} : vector<8x1152xf32> to vector<8x128xf32>
    %81 = arith.mulf %79, %80 : vector<8x128xf32>
    %82 = arith.addf %77, %81 : vector<8x128xf32>
    %83 = arith.mulf %67, %73 : vector<8x16xf32>
    %cst_24 = arith.constant dense<0.000000e+00> : vector<8x128xf32>
    %84 = tpu.matmul %83, %46, %cst_24 {dimension_numbers = #tpu.dot_dimension_numbers<[1], [0], [0], [1], [0, 0, 1, 1], [], []>} : vector<8x16xf32>, vector<16x128xf32>, vector<8x128xf32> -> vector<8x128xf32>
    %85 = vector.extract_strided_slice %43 {offsets = [0, 896], sizes = [8, 128], strides = [1, 1]} : vector<8x1152xf32> to vector<8x128xf32>
    %86 = arith.mulf %84, %85 : vector<8x128xf32>
    %87 = arith.addf %82, %86 : vector<8x128xf32>
    %88 = arith.mulf %69, %73 : vector<8x16xf32>
    %cst_25 = arith.constant dense<0.000000e+00> : vector<8x128xf32>
    %89 = tpu.matmul %88, %46, %cst_25 {dimension_numbers = #tpu.dot_dimension_numbers<[1], [0], [0], [1], [0, 0, 1, 1], [], []>} : vector<8x16xf32>, vector<16x128xf32>, vector<8x128xf32> -> vector<8x128xf32>
    %90 = vector.extract_strided_slice %43 {offsets = [0, 1024], sizes = [8, 128], strides = [1, 1]} : vector<8x1152xf32> to vector<8x128xf32>
    %91 = arith.mulf %89, %90 : vector<8x128xf32>
    %92 = arith.addf %87, %91 : vector<8x128xf32>
    %c0_26 = arith.constant 0 : index
    %c0_27 = arith.constant 0 : index
    %93 = vector.load %arg7[%c0_26, %c0_27] : memref<128x64xf32, #tpu.memory_space<vmem>>, vector<128x64xf32>
    %cst_28 = arith.constant dense<0.000000e+00> : vector<8x64xf32>
    %94 = tpu.matmul %92, %93, %cst_28 {dimension_numbers = #tpu.dot_dimension_numbers<[1], [0], [0], [1], [0, 0, 1, 1], [], []>} : vector<8x128xf32>, vector<128x64xf32>, vector<8x64xf32> -> vector<8x64xf32>
    %c0_29 = arith.constant 0 : index
    %c0_30 = arith.constant 0 : index
    %95 = vector.load %arg2[%c0_29, %c0_30] : memref<8x6xf32, #tpu.memory_space<vmem>>, vector<8x6xf32>
    %c0_31 = arith.constant 0 : index
    %c0_32 = arith.constant 0 : index
    %96 = vector.load %arg8[%c0_31, %c0_32] : memref<6x64xf32, #tpu.memory_space<vmem>>, vector<6x64xf32>
    %cst_33 = arith.constant dense<0.000000e+00> : vector<8x64xf32>
    %97 = tpu.matmul %95, %96, %cst_33 {dimension_numbers = #tpu.dot_dimension_numbers<[1], [0], [0], [1], [0, 0, 1, 1], [], []>} : vector<8x6xf32>, vector<6x64xf32>, vector<8x64xf32> -> vector<8x64xf32>
    %98 = arith.addf %94, %97 : vector<8x64xf32>
    %c0_34 = arith.constant 0 : index
    %c0_35 = arith.constant 0 : index
    %99 = vector.load %arg9[%c0_34, %c0_35] : memref<1x64xf32, #tpu.memory_space<vmem>>, vector<1x64xf32>
    %100 = vector.broadcast %99 : vector<1x64xf32> to vector<8x64xf32>
    %101 = arith.addf %98, %100 : vector<8x64xf32>
    %cst_36 = arith.constant 0.000000e+00 : f32
    %102 = vector.broadcast %cst_36 : f32 to vector<8x64xf32>
    %103 = arith.maximumf %101, %102 : vector<8x64xf32>
    %c0_37 = arith.constant 0 : index
    %c0_38 = arith.constant 0 : index
    %104 = vector.load %arg10[%c0_37, %c0_38] : memref<64x2xf32, #tpu.memory_space<vmem>>, vector<64x2xf32>
    %cst_39 = arith.constant dense<0.000000e+00> : vector<8x2xf32>
    %105 = tpu.matmul %103, %104, %cst_39 {dimension_numbers = #tpu.dot_dimension_numbers<[1], [0], [0], [1], [0, 0, 1, 1], [], []>} : vector<8x64xf32>, vector<64x2xf32>, vector<8x2xf32> -> vector<8x2xf32>
    %c0_40 = arith.constant 0 : index
    %c0_41 = arith.constant 0 : index
    %106 = vector.load %arg11[%c0_40, %c0_41] : memref<1x2xf32, #tpu.memory_space<vmem>>, vector<1x2xf32>
    %107 = vector.broadcast %106 : vector<1x2xf32> to vector<8x2xf32>
    %108 = arith.addf %105, %107 : vector<8x2xf32>
    %c0_42 = arith.constant 0 : index
    %c0_43 = arith.constant 0 : index
    %109 = vector.load %arg12[%c0_42, %c0_43] : memref<8x2xf32, #tpu.memory_space<vmem>>, vector<8x2xf32>
    tpu.vector_store %arg12[%c0_42, %c0_43], %108 {strides = array<i32>} : memref<8x2xf32, #tpu.memory_space<vmem>>, vector<8x2xf32>,
    return
  }
  func.func @transform_0(%arg0: i32) -> (i32, i32) {
    %c0_i32 = arith.constant 0 : i32
    %c0_i32_0 = arith.constant 0 : i32
    return %arg0, %c0_i32 : i32, i32
  }
  func.func @transform_1(%arg0: i32) -> (i32, i32) {
    %c0_i32 = arith.constant 0 : i32
    %c0_i32_0 = arith.constant 0 : i32
    return %arg0, %c0_i32 : i32, i32
  }
  func.func @transform_2(%arg0: i32) -> (i32, i32) {
    %c0_i32 = arith.constant 0 : i32
    %c0_i32_0 = arith.constant 0 : i32
    %c0_i32_1 = arith.constant 0 : i32
    return %c0_i32, %c0_i32_0 : i32, i32
  }
  func.func @transform_3(%arg0: i32) -> (i32, i32) {
    %c0_i32 = arith.constant 0 : i32
    %c0_i32_0 = arith.constant 0 : i32
    %c0_i32_1 = arith.constant 0 : i32
    return %c0_i32, %c0_i32_0 : i32, i32
  }
  func.func @transform_4(%arg0: i32) -> (i32, i32) {
    %c0_i32 = arith.constant 0 : i32
    %c0_i32_0 = arith.constant 0 : i32
    %c0_i32_1 = arith.constant 0 : i32
    return %c0_i32, %c0_i32_0 : i32, i32
  }
  func.func @transform_5(%arg0: i32) -> (i32, i32) {
    %c0_i32 = arith.constant 0 : i32
    %c0_i32_0 = arith.constant 0 : i32
    %c0_i32_1 = arith.constant 0 : i32
    return %c0_i32, %c0_i32_0 : i32, i32
  }
  func.func @transform_6(%arg0: i32) -> (i32, i32) {
    %c0_i32 = arith.constant 0 : i32
    %c0_i32_0 = arith.constant 0 : i32
    %c0_i32_1 = arith.constant 0 : i32
    return %c0_i32, %c0_i32_0 : i32, i32
  }
  func.func @transform_7(%arg0: i32) -> (i32, i32) {
    %c0_i32 = arith.constant 0 : i32
    %c0_i32_0 = arith.constant 0 : i32
    %c0_i32_1 = arith.constant 0 : i32
    return %c0_i32, %c0_i32_0 : i32, i32
  }
  func.func @transform_8(%arg0: i32) -> (i32, i32) {
    %c0_i32 = arith.constant 0 : i32
    %c0_i32_0 = arith.constant 0 : i32
    %c0_i32_1 = arith.constant 0 : i32
    return %c0_i32, %c0_i32_0 : i32, i32
  }
  func.func @transform_9(%arg0: i32) -> (i32, i32) {
    %c0_i32 = arith.constant 0 : i32
    %c0_i32_0 = arith.constant 0 : i32
    %c0_i32_1 = arith.constant 0 : i32
    return %c0_i32, %c0_i32_0 : i32, i32
  }
  func.func @transform_10(%arg0: i32) -> (i32, i32) {
    %c0_i32 = arith.constant 0 : i32
    %c0_i32_0 = arith.constant 0 : i32
    %c0_i32_1 = arith.constant 0 : i32
    return %c0_i32, %c0_i32_0 : i32, i32
  }
  func.func @transform_11(%arg0: i32) -> (i32, i32) {
    %c0_i32 = arith.constant 0 : i32
    %c0_i32_0 = arith.constant 0 : i32
    return %arg0, %c0_i32 : i32, i32
  }
}

</mosaic_0001>

<bundles_post_ra>
// kernel: tpu_custom_call.1
= control target key start
LH: loop header
LB: loop body
LE: loop exit
PB: predicated region body
PF: predicated region fallthrough
CT: control target
= control target key end

     0   :  { %16 = vsyncpa [#allocation3], 0  ;;  %s2655_s0 = inlined_call_operand.vmem [shape: s32[8,4], index: 0, kind: input, shape index: {}]   ;;  %s2656_s1 = inlined_call_operand.hbm [shape: f32[8,6], index: 1, kind: input, shape index: {}]   ;;  %s2657_s2 = inlined_call_operand.vmem [shape: f32[40,1152], index: 2, kind: input, shape index: {}]   ;;  %s2658_s3 = inlined_call_operand.hbm [shape: f32[1,1152], index: 3, kind: input, shape index: {}]   ;;  %s2659_s4 = inlined_call_operand.vmem [shape: f32[128,16], index: 4, kind: input, shape index: {}]   ;;  %s2660_s5 = inlined_call_operand.hbm [shape: f32[16,128], index: 5, kind: input, shape index: {}]   ;;  %s2661_s6 = inlined_call_operand.vmem [shape: f32[128,64], index: 6, kind: input, shape index: {}]   ;;  %s2662_s7 = inlined_call_operand.vmem [shape: f32[6,64], index: 7, kind: input, shape index: {}]   ;;  %s2663_s8 = inlined_call_operand.vmem [shape: f32[1,64], index: 8, kind: input, shape index: {}]   ;;  %s2664_s9 = inlined_call_operand.vmem [shape: f32[64,2], index: 9, kind: input, shape index: {}]   ;;  %s2665_s10 = inlined_call_operand.vmem [shape: f32[1,2], index: 10, kind: input, shape index: {}]   ;;  %s2666_s11 = inlined_call_operand.vmem [shape: f32[8,2], index: 11, kind: output, shape index: {}]  }
   0x1   :  { %17 = vsyncpa [#allocation5], 0  ;;  %s2102_s17 = smov [#allocation4]   ;;  %s2103_s19 = smov [#allocation2]  }
   0x2   :  { %s38_s18 = sshll.u32 %s2102_s17, 4  ;;  %s26_s20 = sshll.u32 %s2103_s19, 4  ;;  %s39_s18 = int_to_ptr.vmem [resolvable:$true] %s38_s18  ;;  %s27_s20 = int_to_ptr.vmem [resolvable:$true] %s26_s20 }
   0x3   :  { %s2032_s23 = scalar_lea.hbm %s2658_s3, 144 }
   0x4   :  { %p2033_p0 = scmp.ne.s32.totalorder %s2658_s3, %s2032_s23  ;;  %p2036_p1 = scmp.lt.u32.totalorder %s2032_s23, %s2658_s3 }
   0x6   :  { %p2038_p2 = pnand %p2036_p1, %p2033_p0 }
   0x8   :  { %2041 = shalt.err (!%p2038_p2)
}
   0x9   :  { %s2042_s28 = scalar_lea.vmem %s39_s18, 144  ;;  %s2046_s29 = scalar_lea.vmem %s39_s18, 160 }
   0xa   :  { %p2043_p3 = scmp.ne.s32.totalorder %s39_s18, %s2042_s28  ;;  %p2047_p4 = scmp.lt.s32.totalorder %s39_s18, %s39_s18 }
   0xb   :  { %p2048_p5 = scmp.lt.s32.totalorder %s2046_s29, %s2042_s28 }
   0xd   :  { %p2049_p6 = por %p2048_p5, %p2047_p4 }
   0xf   :  { %p2050_p7 = pnand %p2049_p6, %p2043_p3 }
  0x11   :  { %2053 = shalt.err (!%p2050_p7)
}
  0x12   :  { %41 = dma.hbm_to_vmem [thread:$0]  %s2658_s3, 144, %s39_s18, [#allocation5]  }
  0x13   :  { %s2054_s15 = scalar_lea.hbm %s2656_s1, 128 }
  0x14   :  { %p2055_p8 = scmp.ne.s32.totalorder %s2656_s1, %s2054_s15  ;;  %p2058_p9 = scmp.lt.u32.totalorder %s2054_s15, %s2656_s1 }
  0x16   :  { %p2060_p10 = pnand %p2058_p9, %p2055_p8 }
  0x18   :  { %2063 = shalt.err (!%p2060_p10)
}
  0x19   :  { %s2064_s22 = scalar_lea.vmem %s27_s20, 128  ;;  %p2069_p12 = scmp.lt.s32.totalorder %s27_s20, %s27_s20 }
  0x1a   :  { %p2065_p11 = scmp.ne.s32.totalorder %s27_s20, %s2064_s22  ;;  %p2070_p13 = scmp.lt.s32.totalorder %s2064_s22, %s2064_s22 }
  0x1c   :  { %p2071_p0 = por %p2070_p13, %p2069_p12 }
  0x1e   :  { %p2072_p1 = pnand %p2071_p0, %p2065_p11 }
  0x20   :  { %2075 = shalt.err (!%p2072_p1)
}
  0x21   :  { %29 = dma.hbm_to_vmem [thread:$0]  %s2656_s1, 128, %s27_s20, [#allocation3]  }
  0x22   :  { %s2104_s23 = smov [#allocation6]   ;;  %s2076_s27 = scalar_lea.hbm %s2660_s5, 256 }
  0x23   :  { %s49_s24 = sshll.u32 %s2104_s23, 4  ;;  %p2077_p2 = scmp.ne.s32.totalorder %s2660_s5, %s2076_s27  ;;  %s50_s24 = int_to_ptr.vmem [resolvable:$true] %s49_s24 }
  0x24   :  { %p2080_p3 = scmp.lt.u32.totalorder %s2076_s27, %s2660_s5 }
  0x26   :  { %p2082_p4 = pnand %p2080_p3, %p2077_p2 }
  0x28   :  { %2085 = shalt.err (!%p2082_p4)
}
  0x29   :  { %s2086_s13 = scalar_lea.vmem %s50_s24, 256  ;;  %p2091_p6 = scmp.lt.s32.totalorder %s50_s24, %s50_s24 }
  0x2a   :  { %p2087_p5 = scmp.ne.s32.totalorder %s50_s24, %s2086_s13  ;;  %p2092_p7 = scmp.lt.s32.totalorder %s2086_s13, %s2086_s13 }
  0x2c   :  { %p2093_p8 = por %p2092_p7, %p2091_p6 }
  0x2e   :  { %p2094_p9 = pnand %p2093_p8, %p2087_p5 }
  0x30   :  { %2097 = shalt.err (!%p2094_p9)
}
  0x31   :  { %s2105_s1 = smov 128   ;;  %s2106_s20 = smov 8  }
  0x32   :  { %55 = dma.hbm_to_vmem [thread:$0]  %s2660_s5, 256, %s50_s24, [#allocation5], %s2105_s1, %s2105_s1, %s2106_s20  }
  0x33   :  { %2098 = dma.done.wait [#allocation3], 128  }
  0x34   :  { %2099 = vsyncadd [#allocation3], 4294967168 }
  0x35   :  { %2100 = dma.done.wait [#allocation5], 400  }
  0x36   :  { %2101 = vsyncadd [#allocation5], 4294966896  ;;  %v2107_v0 = vmov 0   ;;  %v2108_v1 = vmov 2   ;;  %v2109_v2 = vmov 0.0   ;;  %v75_v3 = vld [vmem:[%s2655_s0] sm:$0xff]  ;;  %v76_v41 = vlaneseq }
  0x37   :  { %2017 = vset.pattern.permute.xlu0 %v2107_v0  ;;  %2019 = vset.pattern.permute.xlu1 %v2108_v1  ;;  %v106_v4 = vld [vmem:[%s2657_s2 + $0x8] sm:$0xff]  ;;  %v115_v5 = vld [vmem:[%s2657_s2 + $0x50] sm:$0xff]  ;;  %v91_v6 = vadd.s32 20, %v75_v3  ;;  %v105_v10 = vld [vmem:[%s2657_s2] sm:$0xff]  ;;  %v84_v11 = vadd.s32 10, %v75_v3  ;;  %v98_v18 = vadd.s32 30, %v75_v3 }
  0x38   :  { %267 = vmatprep.mubr.f32.mxu1 %v2109_v2  ;;  %409 = vmatprep.mubr.f32.mxu0 %v2109_v2  ;;  %v1823_v7 = vpack.c.bf16 %v115_v5, %v106_v4  ;;  %v110_v8 = vld [vmem:[%s2657_s2 + $0x28] sm:$0xff]  ;;  %v119_v9 = vld [vmem:[%s2657_s2 + $0x70] sm:$0xff]  ;;  %v109_v14 = vld [vmem:[%s2657_s2 + $0x20] sm:$0xff]  ;;  %v2110_v22 = vmov 1   ;;  %v2111_v31 = vmov 3   ;;  %v2112_v40 = vmov 0.0|0.0  }
  0x39   :  { %79 = vperm.xlu0 %2017, %v75_v3   ;;  %v1839_v12 = vpack.c.bf16 %v119_v9, %v110_v8  ;;  %v114_v13 = vld [vmem:[%s2657_s2 + $0x48] sm:$0xff]  ;;  %93 = vperm.xlu1 %2019, %v91_v6   ;;  %v124_v19 = vld [vmem:[%s2657_s2 + $0x98] sm:$0xff]  ;;  %v133_v20 = vld [vmem:[%s2657_s2 + $0xe0] sm:$0xff]  ;;  %v77_v42 = vand.u32 127, %v76_v41  ;;  %vm199_vm4 = vcmask 326656   ;;  %vm2113_vm5 = vmmov 0  }
  0x3a   :  { %v118_v15 = vld [vmem:[%s2657_s2 + $0x68] sm:$0xff]  ;;  %1824 = vmatprep.subr.bf16.mxu1 %v1823_v7  ;;  %v1825_v16 = vpack.c.bf16 %v114_v13, %v105_v10  ;;  %v128_v21 = vld [vmem:[%s2657_s2 + $0xb8] sm:$0xff]  ;;  %v1827_v23 = vpack.c.bf16 %v133_v20, %v124_v19  ;;  %v137_v24 = vld [vmem:[%s2657_s2 + $0x100] sm:$0xff]  ;;  %vm879_vm6 = vcmask 130048   ;;  %vm1204_vm7 = vcmask 1045504  }
  0x3b   :  { %v1841_v17 = vpack.c.bf16 %v118_v15, %v109_v14  ;;  %1840 = vmatprep.subr.bf16.mxu0 %v1839_v12  ;;  %v123_v25 = vld [vmem:[%s2657_s2 + $0x90] sm:$0xff]  ;;  %v132_v26 = vld [vmem:[%s2657_s2 + $0xd8] sm:$0xff]  ;;  %v1843_v27 = vpack.c.bf16 %v137_v24, %v128_v21  ;;  %v142_v33 = vld [vmem:[%s2657_s2 + $0x128] sm:$0xff]  ;;  %vm1200_vm8 = vcmask 48128   ;;  %vm1372_vm9 = vcmask 523264  }
  0x3c   :  { %1826 = vmatpush1.bf16.msra.mxu1 %v1825_v16  ;;  %v1829_v28 = vpack.c.bf16 %v132_v26, %v123_v25  ;;  %v127_v29 = vld [vmem:[%s2657_s2 + $0xb0] sm:$0xff]  ;;  %v136_v30 = vld [vmem:[%s2657_s2 + $0xf8] sm:$0xff]  ;;  %v146_v34 = vld [vmem:[%s2657_s2 + $0x148] sm:$0xff]  ;;  %vm1446_vm10 = vcmask 15360  }
  0x3d   :  { %2018 = vset.pattern.permute.xlu0 %v2110_v22  ;;  %1842 = vmatpush1.bf16.msra.mxu0 %v1841_v17  ;;  %v1845_v32 = vpack.c.bf16 %v136_v30, %v127_v29  ;;  %v108_v35 = vld [vmem:[%s2657_s2 + $0x18] sm:$0xff]  ;;  %v141_v36 = vld [vmem:[%s2657_s2 + $0x120] sm:$0xff]  ;;  %v107_v49 = vld [vmem:[%s2657_s2 + $0x10] sm:$0xff] }
  0x3e   :  { %86 = vperm.xlu0 %2018, %v84_v11   ;;  %2020 = vset.pattern.permute.xlu1 %v2111_v31  ;;  %v145_v37 = vld [vmem:[%s2657_s2 + $0x140] sm:$0xff]  ;;  %v116_v51 = vld [vmem:[%s2657_s2 + $0x58] sm:$0xff]  ;;  %v122_v53 = vld [vmem:[%s2657_s2 + $0x88] sm:$0xff] }
  0x3f   :  { %1828 = vmatprep.subr.bf16.mxu1 %v1827_v23  ;;  %100 = vperm.xlu1 %2020, %v98_v18   ;;  %v117_v38 = vld [vmem:[%s2657_s2 + $0x60] sm:$0xff]  ;;  %v126_v56 = vld [vmem:[%s2657_s2 + $0xa8] sm:$0xff]  ;;  %v135_v57 = vld [vmem:[%s2657_s2 + $0xf0] sm:$0xff]  ;;  %v1833_v59 = vpack.c.bf16 %v116_v51, %v107_v49  ;;  %v2470_v49 = vshrl.u32 %v76_v41, 7 }
  0x40   :  { %1844 = vmatprep.subr.bf16.mxu0 %v1843_v27  ;;  %1830 = vmatpush1.bf16.msra.mxu1 %v1829_v28  ;;  %v1831_v39 = vpack.c.bf16 %v117_v38, %v108_v35  ;;  %v113_v52 = vld [vmem:[%s2657_s2 + $0x40] sm:$0xff]  ;;  %v1835_v63 = vpack.c.bf16 %v135_v57, %v126_v56  ;;  %v134_v0 = vld [vmem:[%s2657_s2 + $0xe8] sm:$0xff]  ;;  %v131_v1 = vld [vmem:[%s2657_s2 + $0xd0] sm:$0xff] }
  0x41   :  { %1846 = vmatpush1.bf16.msra.mxu0 %v1845_v32  ;;  %211 = vmatprep.subr.mxu1 %v142_v33  ;;  %v1856_v60 = vpack.c.bf16 %v122_v53, %v113_v52  ;;  %v125_v61 = vld [vmem:[%s2657_s2 + $0xa0] sm:$0xff]  ;;  %v140_v3 = vld [vmem:[%s2657_s2 + $0x118] sm:$0xff]  ;;  %v111_v9 = vld [vmem:[%s2657_s2 + $0x30] sm:$0xff]  ;;  %v172_v51 = vsub.s32 4, %v2470_v49  ;;  %v160_v53 = vsub.s32 1, %v2470_v49 }
  0x42   :  { %2021 = vset.pattern.permute.xlu0 %v2111_v31  ;;  %353 = vmatprep.subr.mxu0 %v146_v34  ;;  %v1837_v4 = vpack.c.bf16 %v134_v0, %v125_v61  ;;  %v1859_v5 = vpack.c.bf16 %v140_v3, %v131_v1  ;;  %v144_v6 = vld [vmem:[%s2657_s2 + $0x138] sm:$0xff]  ;;  %v121_v8 = vld [vmem:[%s2657_s2 + $0x80] sm:$0xff]  ;;  %v130_v11 = vld [vmem:[%s2657_s2 + $0xc8] sm:$0xff]  ;;  %v164_v0 = vsub.s32 2, %v2470_v49  ;;  %v168_v3 = vsub.s32 3, %v2470_v49 }
  0x43   :  { %v112_v7 = vld [vmem:[%s2657_s2 + $0x38] sm:$0xff]  ;;  %v139_v12 = vld [vmem:[%s2657_s2 + $0x110] sm:$0xff]  ;;  %v149_v14 = vld [vmem:[%s2657_s2 + $0x160] sm:$0xff] }
  0x44   :  { %212 = vmatpush1.msra.mxu1 %v141_v36  ;;  %v120_v10 = vld [vmem:[%s2657_s2 + $0x78] sm:$0xff]  ;;  %v143_v13 = vld [vmem:[%s2657_s2 + $0x130] sm:$0xff]  ;;  %v1847_v15 = vpack.c.bf16 %v121_v8, %v112_v7  ;;  %v1851_v17 = vpack.c.bf16 %v139_v12, %v130_v11  ;;  %v129_v18 = vld [vmem:[%s2657_s2 + $0xc0] sm:$0xff] }
  0x45   :  { %354 = vmatpush1.msra.mxu0 %v145_v37  ;;  %1832 = vmatprep.subr.bf16.mxu1 %v1831_v39  ;;  %v1849_v16 = vpack.c.bf16 %v120_v10, %v111_v9  ;;  %v138_v19 = vld [vmem:[%s2657_s2 + $0x108] sm:$0xff]  ;;  %v557_v20 = vld [vmem:[%s2659_s4] sm:$0xff]  ;;  %v148_v24 = vld [vmem:[%s2657_s2 + $0x158] sm:$0xff] }
  0x46   :  { %1855 = vmatprep.subr.bf16.mxu0 %v2112_v40  ;;  %v558_v21 = vld [vmem:[%s2659_s4 + $0x8] sm:$0xff]  ;;  %v1853_v22 = vpack.c.bf16 %v138_v19, %v129_v18  ;;  %v559_v25 = vld [vmem:[%s2659_s4 + $0x10] sm:$0xff]  ;;  %v560_v26 = vld [vmem:[%s2659_s4 + $0x18] sm:$0xff] }
  0x47   :  { %v2366_v23 = vpack.c.bf16 %v558_v21, %v557_v20  ;;  %v147_v27 = vld [vmem:[%s2657_s2 + $0x150] sm:$0xff]  ;;  %v2385_v28 = vpack.c.bf16 %v560_v26, %v559_v25  ;;  %v561_v29 = vld [vmem:[%s2659_s4 + $0x20] sm:$0xff]  ;;  %v562_v30 = vld [vmem:[%s2659_s4 + $0x28] sm:$0xff] }
  0x48   :  { %v2397_v31 = vpack.c.bf16 %v562_v30, %v561_v29  ;;  %v563_v32 = vld [vmem:[%s2659_s4 + $0x30] sm:$0xff]  ;;  %v564_v33 = vld [vmem:[%s2659_s4 + $0x38] sm:$0xff]  ;;  %v565_v35 = vld [vmem:[%s2659_s4 + $0x40] sm:$0xff] }
  0x49   :  { %v2411_v34 = vpack.c.bf16 %v564_v33, %v563_v32  ;;  %v566_v36 = vld [vmem:[%s2659_s4 + $0x48] sm:$0xff]  ;;  %v567_v38 = vld [vmem:[%s2659_s4 + $0x50] sm:$0xff]  ;;  %v568_v39 = vld [vmem:[%s2659_s4 + $0x58] sm:$0xff] }
  0x4a   :  { %v2423_v37 = vpack.c.bf16 %v566_v36, %v565_v35  ;;  %v2474_v52 = vld [vmem:[#allocation4] sm:$0xff] }
  0x4b   :  { %v161_v56 = vrot.slane %v2474_v52, %v160_v53 }
  0xb8   :  { %v80_v43 = vpop.permute.xlu0 %79  ;;  %v94_v44 = vpop.permute.xlu1 %93 }
  0xb9   :  { %vm81_vm0 = vcmp.eq.s32.totalorder %v77_v42, %v80_v43  ;;  %vm95_vm1 = vcmp.eq.s32.totalorder %v77_v42, %v94_v44  ;;  %v569_v43 = vld [vmem:[%s2659_s4 + $0x60] sm:$0xff]  ;;  %v570_v44 = vld [vmem:[%s2659_s4 + $0x68] sm:$0xff] }
  0xba   :  { %v82_v46 = vsel %vm81_vm0, 1.0, %v2109_v2  ;;  %v96_v54 = vsel %vm95_vm1, 1.0, %v2109_v2 }
  0xbd   :  { %v87_v45 = vpop.permute.xlu0 %86 }
  0xbe   :  { %vm88_vm2 = vcmp.eq.s32.totalorder %v77_v42, %v87_v45  ;;  %v101_v48 = vpop.permute.xlu1 %100  ;;  %v2447_v45 = vpack.c.bf16 %v570_v44, %v569_v43 }
  0xbf   :  { %v89_v47 = vsel %vm88_vm2, 1.0, %v2109_v2  ;;  %vm102_vm3 = vcmp.eq.s32.totalorder %v77_v42, %v101_v48  ;;  %v2435_v42 = vpack.c.bf16 %v568_v39, %v567_v38 }
  0xc0   :  { %v90_v50 = vadd.f32 %v89_v47, %v82_v46  ;;  %v103_v55 = vsel %vm102_vm3, 1.0, %v2109_v2  ;;  %v571_v46 = vld [vmem:[%s2659_s4 + $0x70] sm:$0xff]  ;;  %v572_v47 = vld [vmem:[%s2659_s4 + $0x78] sm:$0xff] }
  0xc1   :  { %v2463_v48 = vpack.c.bf16 %v572_v47, %v571_v46 }
  0xc2   :  { %v97_v58 = vadd.f32 %v96_v54, %v90_v50  ;;  %v156_v50 = vsub.s32 0, %v2470_v49 }
  0xc4   :  { %v104_v62 = vadd.f32 %v103_v55, %v97_v58  ;;  %v157_v54 = vrot.slane %v2474_v52, %v156_v50  ;;  %v173_v55 = vrot.slane %v2474_v52, %v172_v51 }
  0xc6   :  { %1455 = vmatmul.mubr.msk.f32.vlgmr.msra.gmra.mrb[0].mxu1 %vm199_vm4, %v104_v62  ;;  %1457 = vmatmul.mubr.msk.f32.vlgmr.msra.gmra.mrb[0].mxu0 %vm199_vm4, %v104_v62 }
  0xc7   :  { %1834 = vmatpush1.bf16.msra.mxu1 %v1833_v59  ;;  %1857 = vmatpush3.bf16.msra.mxu0 %v1856_v60 }
  0xc8   :  { %1836 = vmatprep.subr.bf16.mxu1 %v1835_v63  ;;  %1858 = vmatprep.subr.bf16.mxu0 %v2112_v40 }
  0xc9   :  { %338 = vmatprep.mubr.f32.mxu1 %v2109_v2  ;;  %1593 = vmatprep.mubr.msk.f32.mxu0 %vm2113_vm5, %v2109_v2 }
  0xcb   :  { %1838 = vmatpush1.bf16.msra.mxu1 %v1837_v4  ;;  %1860 = vmatpush3.bf16.msra.mxu0 %v1859_v5  ;;  %v165_v4 = vrot.slane %v2474_v52, %v164_v0  ;;  %v169_v5 = vrot.slane %v2474_v52, %v168_v3  ;;  %v1189_v0 = vld [vmem:[%s2661_s6 + $0x38] sm:$0xff]  ;;  %v1190_v3 = vld [vmem:[%s2661_s6 + $0x40] sm:$0xff] }
  0xcc   :  { %282 = vmatprep.subr.mxu1 %v144_v6  ;;  %1591 = vmatprep.subr.mxu0 %v2109_v2 }
  0xcf   :  { %283 = vmatpush1.msra.mxu1 %v143_v13  ;;  %1592 = vmatpush3.msra.mxu0 %v149_v14 }
  0xd0   :  { %1456 = vmatmul.mubr.msk.f32.vlgmr.msra.gmra.mrb[2].mxu1 %vm199_vm4, %v104_v62  ;;  %1848 = vmatprep.subr.bf16.mxu1 %v1847_v15 }
  0xd1   :  { %1594 = vmatmul.mubr.msk.f32.vlgmr.msra.gmra.mrb[2].mxu0 %vm199_vm4, %v104_v62  ;;  %1850 = vmatpush1.bf16.msra.mxu1 %v1849_v16  ;;  %v573_v16 = vld [vmem:[#allocation6] sm:$0xff] }
  0xd2   :  { %1852 = vmatprep.subr.bf16.mxu1 %v1851_v17  ;;  %480 = vmatprep.mubr.f32.mxu1 %v2109_v2  ;;  %v574_v17 = vld [vmem:[#allocation6 + $0x8] sm:$0xff] }
  0xd3   :  { %1885 = vmatprep.subr.bf16.mxu0 %v2112_v40  ;;  %1663 = vmatprep.mubr.msk.f32.mxu0 %vm2113_vm5, %v2109_v2  ;;  %v1958_v18 = vpack.c.bf16 %v574_v17, %v573_v16  ;;  %v1197_v16 = vld [vmem:[%s2661_s6 + $0x78] sm:$0xff] }
  0xd4   :  { %1887 = vmatpush3.bf16.msra.mxu0 %v2366_v23 }
  0xd5   :  { %1854 = vmatpush1.bf16.msra.mxu1 %v1853_v22  ;;  %1888 = vmatprep.subr.bf16.mxu0 %v2112_v40 }
  0xd6   :  { %424 = vmatprep.subr.mxu1 %v148_v24 }
  0xd8   :  { %1890 = vmatpush3.bf16.msra.mxu0 %v2385_v28 }
  0xd9   :  { %425 = vmatpush1.msra.mxu1 %v147_v27  ;;  %1891 = vmatprep.subr.bf16.mxu0 %v2112_v40 }
  0xda   :  { %1458 = vmatmul.mubr.msk.f32.vlgmr.msra.gmra.mrb[4].mxu1 %vm199_vm4, %v104_v62  ;;  %1861 = vmatprep.subr.bf16.mxu1 %v2112_v40 }
  0xdb   :  { %1863 = vmatpush3.bf16.msra.mxu1 %v2366_v23  ;;  %1628 = vmatprep.mubr.msk.f32.mxu1 %vm2113_vm5, %v2109_v2 }
  0xdc   :  { %1864 = vmatprep.subr.bf16.mxu1 %v2112_v40  ;;  %1893 = vmatpush3.bf16.msra.mxu0 %v2397_v31 }
  0xdd   :  { %1894 = vmatprep.subr.bf16.mxu0 %v2112_v40 }
  0xdf   :  { %1866 = vmatpush3.bf16.msra.mxu1 %v2385_v28 }
  0xe0   :  { %1867 = vmatprep.subr.bf16.mxu1 %v2112_v40  ;;  %1896 = vmatpush3.bf16.msra.mxu0 %v2411_v34 }
  0xe1   :  { %1897 = vmatprep.subr.bf16.mxu0 %v2112_v40 }
  0xe3   :  { %1869 = vmatpush3.bf16.msra.mxu1 %v2397_v31 }
  0xe4   :  { %1870 = vmatprep.subr.bf16.mxu1 %v2112_v40  ;;  %1899 = vmatpush3.bf16.msra.mxu0 %v2423_v37 }
  0xe5   :  { %1900 = vmatprep.subr.bf16.mxu0 %v2112_v40 }
  0xe7   :  { %1872 = vmatpush3.bf16.msra.mxu1 %v2411_v34 }
  0xe8   :  { %1873 = vmatprep.subr.bf16.mxu1 %v2112_v40  ;;  %1902 = vmatpush3.bf16.msra.mxu0 %v2435_v42 }
  0xe9   :  { %1903 = vmatprep.subr.bf16.mxu0 %v2112_v40 }
  0xeb   :  { %1875 = vmatpush3.bf16.msra.mxu1 %v2423_v37 }
  0xec   :  { %1876 = vmatprep.subr.bf16.mxu1 %v2112_v40  ;;  %1905 = vmatpush3.bf16.msra.mxu0 %v2447_v45 }
  0xed   :  { %1906 = vmatprep.subr.bf16.mxu0 %v2112_v40 }
  0xef   :  { %1878 = vmatpush3.bf16.msra.mxu1 %v2435_v42 }
  0xf0   :  { %1879 = vmatprep.subr.bf16.mxu1 %v2112_v40  ;;  %1908 = vmatpush3.bf16.msra.mxu0 %v2463_v48 }
  0xf1   :  { %1933 = vmatprep.subr.bf16.mxu0 %v2112_v40 }
  0xf3   :  { %1881 = vmatpush3.bf16.msra.mxu1 %v2447_v45 }
  0xf4   :  { %1882 = vmatprep.subr.bf16.mxu1 %v2112_v40 }
  0xf7   :  { %1884 = vmatpush3.bf16.msra.mxu1 %v2463_v48 }
  0xf8   :  { %1909 = vmatprep.subr.bf16.mxu1 %v2112_v40 }
 0x199   :  { %v269_v57 = vpop.f32.mrb[0].mxu1  ;;  %v411_v58 = vpop.f32.mrb[0].mxu0 }
 0x19a   :  { %v270_v59 = vadd.f32 %v269_v57, %v157_v54  ;;  %v412_v60 = vadd.f32 %v411_v58, %v173_v55  ;;  %v271_v41 = vpop.f32.mrb[1].mxu1  ;;  %v2480_v61 = vpop.f32.mrb[1].mxu0  ;;  %v1182_v54 = vld [vmem:[%s2661_s6] sm:$0xff]  ;;  %v1183_v55 = vld [vmem:[%s2661_s6 + $0x8] sm:$0xff]  ;;  %v1184_v57 = vld [vmem:[%s2661_s6 + $0x10] sm:$0xff] }
 0x19b   :  { %v272_v62 = vadd.f32 %v271_v41, %v161_v56  ;;  %v1970_v56 = vpack.c.bf16 %v1183_v55, %v1182_v54  ;;  %v1185_v58 = vld [vmem:[%s2661_s6 + $0x18] sm:$0xff]  ;;  %v1187_v41 = vld [vmem:[%s2661_s6 + $0x28] sm:$0xff]  ;;  %v1363_v54 = vld [vmem:[%s2664_s9 + $0x30] sm:$0xff] }
 0x19c   :  { %v788_v63 = vmul.f32 %v412_v60, %v270_v59  ;;  %v1186_v60 = vld [vmem:[%s2661_s6 + $0x20] sm:$0xff]  ;;  %v1364_v55 = vld [vmem:[%s2664_s9 + $0x38] sm:$0xff] }
 0x19d   :  { %v575_v1 = vmul.f32 %v272_v62, %v270_v59  ;;  %v1976_v62 = vpack.c.bf16 %v1187_v41, %v1186_v60 }
 0x19f   :  { %1629 = vmatmul.mubr.f32.vlgmr.msra.gmra.mrb[6].mxu1 %v575_v1 }
 0x1a0   :  { %1911 = vmatpush3.bf16.msra.mxu1 %v2366_v23  ;;  %1698 = vmatprep.mubr.msk.f32.mxu1 %vm2113_vm5, %v2109_v2 }
 0x1a1   :  { %1912 = vmatprep.subr.bf16.mxu1 %v2112_v40 }
 0x1a3   :  { %v340_v6 = vpop.f32.mrb[2].mxu1 }
 0x1a4   :  { %v341_v7 = vadd.f32 %v340_v6, %v165_v4  ;;  %v2490_v8 = vpop.f32.mrb[2].mxu0  ;;  %v342_v9 = vpop.f32.mrb[3].mxu1  ;;  %1914 = vmatpush3.bf16.msra.mxu1 %v2385_v28  ;;  %v1191_v4 = vld [vmem:[%s2661_s6 + $0x48] sm:$0xff]  ;;  %v1192_v6 = vld [vmem:[%s2661_s6 + $0x50] sm:$0xff] }
 0x1a5   :  { %v343_v10 = vadd.f32 %v342_v9, %v169_v5  ;;  %v1595_v11 = vpop.f32.mrb[3].mxu0  ;;  %1915 = vmatprep.subr.bf16.mxu1 %v2112_v40  ;;  %v1982_v5 = vpack.c.bf16 %v1191_v4, %v1190_v3 }
 0x1a6   :  { %v646_v12 = vmul.f32 %v341_v7, %v270_v59  ;;  %v1193_v7 = vld [vmem:[%s2661_s6 + $0x58] sm:$0xff]  ;;  %v1195_v11 = vld [vmem:[%s2661_s6 + $0x68] sm:$0xff] }
 0x1a7   :  { %v717_v13 = vmul.f32 %v343_v10, %v270_v59  ;;  %v1973_v59 = vpack.c.bf16 %v1185_v58, %v1184_v57  ;;  %v1985_v9 = vpack.c.bf16 %v1193_v7, %v1192_v6  ;;  %v1194_v10 = vld [vmem:[%s2661_s6 + $0x60] sm:$0xff] }
 0x1a8   :  { %1664 = vmatmul.mubr.f32.vlgmr.msra.gmra.mrb[4].mxu0 %v646_v12  ;;  %1917 = vmatpush3.bf16.msra.mxu1 %v2397_v31  ;;  %v1988_v12 = vpack.c.bf16 %v1195_v11, %v1194_v10  ;;  %v1466_v58 = vld [vmem:[%s2663_s8] ss:$0 sm:$0xff] }
 0x1a9   :  { %1935 = vmatpush3.bf16.msra.mxu0 %v2366_v23  ;;  %1918 = vmatprep.subr.bf16.mxu1 %v2112_v40 }
 0x1aa   :  { %1936 = vmatprep.subr.bf16.mxu0 %v2112_v40  ;;  %1733 = vmatprep.mubr.msk.f32.mxu0 %vm2113_vm5, %v2109_v2 }
 0x1ac   :  { %1920 = vmatpush3.bf16.msra.mxu1 %v2411_v34 }
 0x1ad   :  { %1938 = vmatpush3.bf16.msra.mxu0 %v2385_v28  ;;  %v2502_v14 = vpop.f32.mrb[4].mxu1  ;;  %1921 = vmatprep.subr.bf16.mxu1 %v2112_v40 }
 0x1ae   :  { %v2505_v15 = vpop.f32.mrb[5].mxu1  ;;  %1939 = vmatprep.subr.bf16.mxu0 %v2112_v40 }
 0x1b0   :  { %1923 = vmatpush3.bf16.msra.mxu1 %v2423_v37 }
 0x1b1   :  { %1941 = vmatpush3.bf16.msra.mxu0 %v2397_v31  ;;  %1924 = vmatprep.subr.bf16.mxu1 %v2112_v40 }
 0x1b2   :  { %1942 = vmatprep.subr.bf16.mxu0 %v2112_v40 }
 0x1b4   :  { %1926 = vmatpush3.bf16.msra.mxu1 %v2435_v42 }
 0x1b5   :  { %1944 = vmatpush3.bf16.msra.mxu0 %v2411_v34  ;;  %1927 = vmatprep.subr.bf16.mxu1 %v2112_v40 }
 0x1b6   :  { %1945 = vmatprep.subr.bf16.mxu0 %v2112_v40 }
 0x1b8   :  { %1929 = vmatpush3.bf16.msra.mxu1 %v2447_v45 }
 0x1b9   :  { %1947 = vmatpush3.bf16.msra.mxu0 %v2423_v37  ;;  %1930 = vmatprep.subr.bf16.mxu1 %v2112_v40 }
 0x1ba   :  { %1948 = vmatprep.subr.bf16.mxu0 %v2112_v40 }
 0x1bc   :  { %1932 = vmatpush3.bf16.msra.mxu1 %v2463_v48 }
 0x1bd   :  { %1950 = vmatpush3.bf16.msra.mxu0 %v2435_v42  ;;  %1960 = vmatprep.subr.bf16.mxu1 %v2112_v40 }
 0x1be   :  { %1951 = vmatprep.subr.bf16.mxu0 %v2112_v40 }
 0x1bf   :  { %1699 = vmatmul.mubr.f32.vlgmr.msra.gmra.mrb[8].mxu1 %v717_v13  ;;  %v1196_v13 = vld [vmem:[%s2661_s6 + $0x70] sm:$0xff] }
 0x1c0   :  { %1747 = vmatprep.mubr.msk.f32.mxu1 %vm2113_vm5, %v2109_v2  ;;  %1962 = vmatpush3.bf16.msra.mxu1 %v1958_v18  ;;  %v1991_v17 = vpack.c.bf16 %v1197_v16, %v1196_v13 }
 0x1c1   :  { %1953 = vmatpush3.bf16.msra.mxu0 %v2447_v45  ;;  %1963 = vmatprep.subr.bf16.mxu1 %v2112_v40 }
 0x1c2   :  { %1954 = vmatprep.subr.bf16.mxu0 %v2112_v40 }
 0x1c5   :  { %1956 = vmatpush3.bf16.msra.mxu0 %v2463_v48 }
 0x1c6   :  { %1957 = vmatprep.subr.bf16.mxu0 %v2112_v40 }
 0x1c8   :  { %1734 = vmatmul.mubr.f32.vlgmr.msra.gmra.mrb[6].mxu0 %v788_v63  ;;  %v1188_v63 = vld [vmem:[%s2661_s6 + $0x30] sm:$0xff] }
 0x1c9   :  { %1740 = vmatprep.mubr.msk.f32.mxu0 %vm2113_vm5, %v2109_v2  ;;  %1959 = vmatpush3.bf16.msra.mxu0 %v1958_v18  ;;  %v1979_v1 = vpack.c.bf16 %v1189_v0, %v1188_v63 }
 0x1ca   :  { %1966 = vmatprep.subr.bf16.mxu0 %v2112_v40 }
 0x272   :  { %v642_v19 = vpop.f32.mrb[6].mxu1 }
 0x273   :  { %v1630_v20 = vpop.f32.mrb[7].mxu1 }
 0x274   :  { %v1357_v20 = vld [vmem:[%s2664_s9] sm:$0xff] }
 0x27b   :  { %v713_v21 = vpop.f32.mrb[4].mxu0 }
 0x27c   :  { %v859_v22 = vmax.f32 %v642_v19, %v713_v21  ;;  %v1665_v23 = vpop.f32.mrb[5].mxu0 }
 0x292   :  { %v784_v24 = vpop.f32.mrb[8].mxu1 }
 0x293   :  { %v860_v25 = vmax.f32 %v859_v22, %v784_v24  ;;  %v1700_v26 = vpop.f32.mrb[9].mxu1  ;;  %v1359_v22 = vld [vmem:[%s2664_s9 + $0x10] sm:$0xff] }
 0x294   :  { %v176_v26 = vsub.s32 5, %v2470_v49 }
 0x29b   :  { %v855_v27 = vpop.f32.mrb[6].mxu0 }
 0x29c   :  { %v861_v28 = vmax.f32 %v860_v25, %v855_v27  ;;  %v1735_v29 = vpop.f32.mrb[7].mxu0 }
 0x29e   :  { %v862_v30 = vsub.f32 %v642_v19, %v861_v28  ;;  %v865_v31 = vsub.f32 %v713_v21, %v861_v28  ;;  %v868_v32 = vsub.f32 %v784_v24, %v861_v28  ;;  %v871_v33 = vsub.f32 %v855_v27, %v861_v28  ;;  %v1198_v19 = vld [vmem:[#allocation2] sm:$0xff]  ;;  %v1358_v21 = vld [vmem:[%s2664_s9 + $0x8] sm:$0xff] }
 0x29f   :  { %v1994_v23 = vpack.c.bf16 %v1358_v21, %v1357_v20  ;;  %v1360_v24 = vld [vmem:[%s2664_s9 + $0x18] sm:$0xff]  ;;  %v180_v27 = vsub.s32 6, %v2470_v49  ;;  %v177_v28 = vrot.slane %v2474_v52, %v176_v26 }
 0x2a0   :  { %v863_v34 = vmul.f32 1.442695, %v862_v30  ;;  %v866_v35 = vmul.f32 1.442695, %v865_v31  ;;  %v869_v36 = vmul.f32 1.442695, %v868_v32  ;;  %v1997_v25 = vpack.c.bf16 %v1360_v24, %v1359_v22 }
 0x2a1   :  { %v872_v37 = vmul.f32 1.442695, %v871_v33  ;;  %v181_v29 = vrot.slane %v2474_v52, %v180_v27  ;;  %v184_v30 = vsub.s32 7, %v2470_v49  ;;  %v414_v31 = vadd.f32 %v2480_v61, %v177_v28  ;;  %v1454_v33 = vld [vmem:[#allocation4 + $0x8] ss:$0 sm:$0xff] }
 0x2a2   :  { %2022 = vpow2.f32 %v863_v34 }
 0x2a3   :  { %2024 = vpow2.f32 %v866_v35  ;;  %v185_v32 = vrot.slane %v2474_v52, %v184_v30 }
 0x2a4   :  { %2026 = vpow2.f32 %v869_v36 }
 0x2a5   :  { %2028 = vpow2.f32 %v872_v37 }
 0x2ac   :  { %v2023_v38 = vpop.eup %2022 }
 0x2ad   :  { %v2025_v39 = vpop.eup %2024 }
 0x2ae   :  { %v874_v42 = vadd.f32 %v2025_v39, %v2023_v38  ;;  %v2027_v43 = vpop.eup %2026 }
 0x2af   :  { %v2029_v45 = vpop.eup %2028 }
 0x2b0   :  { %v875_v44 = vadd.f32 %v2027_v43, %v874_v42  ;;  %v554_v42 = vadd.f32 %v1454_v33, %v2490_v8  ;;  %v1362_v8 = vld [vmem:[%s2664_s9 + $0x28] sm:$0xff] }
 0x2b2   :  { %v876_v46 = vadd.f32 %v2029_v45, %v875_v44 }
 0x2b4   :  { %2030 = vrcp.f32 %v876_v46 }
 0x2be   :  { %v2031_v47 = vpop.eup %2030 }
 0x2bf   :  { %v878_v48 = vmul.f32 %v2031_v47, %v2023_v38  ;;  %v954_v50 = vmul.f32 %v2031_v47, %v2025_v39  ;;  %v1030_v51 = vmul.f32 %v2031_v47, %v2027_v43  ;;  %v1106_v53 = vmul.f32 %v2031_v47, %v2029_v45 }
 0x2c0   :  { %v485_v43 = vadd.f32 %v2505_v15, %v185_v32 }
 0x2c1   :  { %1741 = vmatmul.mubr.msk.f32.vlgmr.msra.gmra.mrb[8].mxu0 %vm879_vm6, %v878_v48  ;;  %1748 = vmatmul.mubr.msk.f32.vlgmr.msra.gmra.mrb[10].mxu1 %vm879_vm6, %v954_v50  ;;  %v1361_v50 = vld [vmem:[%s2664_s9 + $0x20] sm:$0xff] }
 0x2c2   :  { %1965 = vmatpush3.bf16.msra.mxu1 %v1958_v18  ;;  %1968 = vmatpush3.bf16.msra.mxu0 %v1958_v18  ;;  %v1199_v18 = vld [vmem:[%s2662_s7] sm:$0x3f]  ;;  %v2000_v15 = vpack.c.bf16 %v1362_v8, %v1361_v50 }
 0x2c3   :  { %1754 = vmatprep.mubr.msk.f32.mxu1 %vm2113_vm5, %v2109_v2  ;;  %1761 = vmatprep.mubr.msk.f32.mxu0 %vm2113_vm5, %v2109_v2 }
 0x2c4   :  { %1969 = vmatprep.subr.bf16.mxu0 %v2112_v40  ;;  %1764 = vmatprep.subr.mxu1 %v2109_v2 }
 0x2c5   :  { %1755 = vmatmul.mubr.msk.f32.vlgmr.msra.gmra.mrb[12].mxu1 %vm879_vm6, %v1030_v51  ;;  %1762 = vmatmul.mubr.msk.f32.vlgmr.msra.gmra.mrb[10].mxu0 %vm879_vm6, %v1106_v53 }
 0x2c6   :  { %1971 = vmatpush3.bf16.msra.mxu0 %v1970_v56  ;;  %1766 = vmatprep.mubr.msk.f32.mxu1 %vm2113_vm5, %v2109_v2  ;;  %v2003_v56 = vpack.c.bf16 %v1364_v55, %v1363_v54 }
 0x2c7   :  { %1972 = vmatprep.subr.bf16.mxu0 %v2112_v40  ;;  %1801 = vmatprep.mubr.msk.f32.mxu0 %vm2113_vm5, %v2109_v2 }
 0x2c8   :  { %1765 = vmatpush3.msk.msra.mxu1 %vm1204_vm7, %v1199_v18 }
 0x2c9   :  { %1767 = vmatmul.mubr.msk.f32.vlgmr.msra.gmra.mrb[14].mxu1 %vm1200_vm8, %v1198_v19  ;;  %1993 = vmatprep.subr.bf16.mxu1 %v2112_v40 }
 0x2ca   :  { %1974 = vmatpush3.bf16.msra.mxu0 %v1973_v59  ;;  %1820 = vmatprep.mubr.msk.f32.mxu1 %vm2113_vm5, %v2109_v2  ;;  %v483_v2 = vadd.f32 %v2502_v14, %v181_v29 }
 0x2cb   :  { %1975 = vmatprep.subr.bf16.mxu0 %v2112_v40  ;;  %1995 = vmatpush3.bf16.msra.mxu1 %v1994_v23 }
 0x2cc   :  { %1996 = vmatprep.subr.bf16.mxu1 %v2112_v40 }
 0x2ce   :  { %1977 = vmatpush3.bf16.msra.mxu0 %v1976_v62  ;;  %v1467_v62 = vld [vmem:[%s2665_s10] ss:$0 sm:$0xff] }
 0x2cf   :  { %1978 = vmatprep.subr.bf16.mxu0 %v2112_v40  ;;  %1998 = vmatpush3.bf16.msra.mxu1 %v1997_v25 }
 0x2d0   :  { %1999 = vmatprep.subr.bf16.mxu1 %v2112_v40 }
 0x2d2   :  { %1980 = vmatpush3.bf16.msra.mxu0 %v1979_v1 }
 0x2d3   :  { %1981 = vmatprep.subr.bf16.mxu0 %v2112_v40  ;;  %2001 = vmatpush3.bf16.msra.mxu1 %v2000_v15 }
 0x2d4   :  { %2002 = vmatprep.subr.bf16.mxu1 %v2112_v40 }
 0x2d6   :  { %1983 = vmatpush3.bf16.msra.mxu0 %v1982_v5 }
 0x2d7   :  { %1984 = vmatprep.subr.bf16.mxu0 %v2112_v40  ;;  %2004 = vmatpush3.bf16.msra.mxu1 %v2003_v56 }
 0x2da   :  { %1986 = vmatpush3.bf16.msra.mxu0 %v1985_v9 }
 0x2db   :  { %1987 = vmatprep.subr.bf16.mxu0 %v2112_v40 }
 0x2de   :  { %1989 = vmatpush3.bf16.msra.mxu0 %v1988_v12 }
 0x2df   :  { %1990 = vmatprep.subr.bf16.mxu0 %v2112_v40 }
 0x2e2   :  { %1992 = vmatpush3.bf16.msra.mxu0 %v1991_v17 }
 0x394   :  { %v949_v34 = vpop.f32.mrb[8].mxu0  ;;  %v1024_v35 = vpop.f32.mrb[10].mxu1 }
 0x395   :  { %v953_v36 = vmul.f32 %v949_v34, %v414_v31  ;;  %v1028_v37 = vmul.f32 %v1024_v35, %v483_v2  ;;  %v1742_v38 = vpop.f32.mrb[9].mxu0  ;;  %v1749_v39 = vpop.f32.mrb[11].mxu1 }
 0x397   :  { %v1029_v44 = vadd.f32 %v1028_v37, %v953_v36 }
 0x398   :  { %v1100_v45 = vpop.f32.mrb[12].mxu1  ;;  %v1176_v49 = vpop.f32.mrb[10].mxu0 }
 0x399   :  { %v1104_v46 = vmul.f32 %v1100_v45, %v485_v43  ;;  %v1180_v61 = vmul.f32 %v1176_v49, %v554_v42  ;;  %v1756_v47 = vpop.f32.mrb[13].mxu1  ;;  %v1763_v14 = vpop.f32.mrb[11].mxu0 }
 0x39b   :  { %v1105_v48 = vadd.f32 %v1104_v46, %v1029_v44 }
 0x39c   :  { %v1274_v51 = vpop.f32.mrb[14].mxu1 }
 0x39d   :  { %v1181_v52 = vadd.f32 %v1180_v61, %v1105_v48  ;;  %v1768_v53 = vpop.f32.mrb[15].mxu1 }
 0x39f   :  { %1802 = vmatmul.mubr.f32.vlgmr.msra.gmra.mrb[12].mxu0 %v1181_v52 }
 0x472   :  { %v1344_v57 = vpop.f32.mrb[12].mxu0 }
 0x473   :  { %v1345_v59 = vadd.f32 %v1344_v57, %v1274_v51  ;;  %v1803_v60 = vpop.f32.mrb[13].mxu0 }
 0x475   :  { %v1355_v41 = vadd.f32 %v1466_v58, %v1345_v59 }
 0x477   :  { %v1356_v40 = vmax.f32 %v1355_v41, 0.0 }
 0x479   :  { %1821 = vmatmul.mubr.msk.f32.vlgmr.msra.gmra.mrb[16].mxu1 %vm1372_vm9, %v1356_v40 }
 0x54c   :  { %v1442_v63 = vpop.f32.mrb[16].mxu1 }
 0x54d   :  { %v1443_v0 = vadd.f32 %v1467_v62, %v1442_v63  ;;  %v1822_v1 = vpop.f32.mrb[17].mxu1 }
 0x54f   :  { %1447 = vst.msk [vmem:[%s2666_s11] sm:$0xff] %vm1446_vm10, %v1443_v0 }
 0x550   :  { %1452 = vsyncpa [#allocation3], 1 }
 0x551   :  { %1453 = vsyncpa [#allocation5], 1 }

</bundles_post_ra>
